<compile_context>
chip_gen: v7x
topology: tpu7x:2x2x1
jax: 0.10.0
libtpu: 0.0.40
codegen_flags: <defaults>
</compile_context>

<pallas_src>
import functools

import jax
import jax.numpy as jnp
import numpy as np
from jax.experimental import pallas as pl
from jax.experimental.pallas import tpu as pltpu


# Conservative per-step VMEM budget for blocks (double buffers) + in-kernel
# f32 temporaries, and an explicit scoped-VMEM limit (raised above the v5e
# 16 MiB default, kept well under v7x's 64 MiB physical capacity).
_VMEM_BUDGET_BYTES = 26 * 1024 * 1024
_VMEM_LIMIT_BYTES = 40 * 1024 * 1024


def _round_up(x, m):
    return ((x + m - 1) // m) * m


def _cout_block_candidates(cout):
    cands = [c for c in (256, 128, 64, 32, 16, 8) if cout % c == 0]
    if cout <= 256:
        cands.append(cout)
    if not cands:
        cands = [cout]
    return sorted(set(cands), reverse=True)


# ---------------------------------------------------------------------------
# Path A: stride == 1, direct conv (in-kernel tap formation, no im2col).
# ---------------------------------------------------------------------------
def _direct_conv_kernel(x_ref, w_ref, scale_ref, bias_ref, o_ref, *, wp, lo):
    # x_ref:     (Cin, Lp)        padded image, flat spatial (compute dtype)
    # w_ref:     (9, Cout_b, Cin) conv weights, tap index t = kh*3 + kw
    # scale_ref: (Cout_b, 1)      fused BN scale (f32)
    # bias_ref:  (Cout_b, 1)      fused BN bias  (f32)
    # o_ref:     (Cout_b, Lo)     output, padded-width row layout (lane dense)
    cout_b = o_ref.shape[0]
    acc = jnp.zeros((cout_b, lo), dtype=jnp.float32)
    for kh in range(3):
        for kw in range(3):
            t = kh * 3 + kw
            d = kh * wp + kw                       # static flat tap offset
            x_tap = x_ref[:, d:d + lo]             # shifted view, (Cin, Lo)
            acc = acc + jnp.dot(w_ref[t], x_tap,
                                preferred_element_type=jnp.float32)
    out = acc * scale_ref[...] + bias_ref[...]     # BN (eval) in f32
    o_ref[...] = jnp.maximum(out, 0.0).astype(o_ref.dtype)


def _conv_bn_relu_direct_s1(x, w, scale, bias, compute_dtype, out_dtype):
    N, Cin, H, W = x.shape
    Cout = w.shape[0]
    Hp, Wp = H + 2, W + 2
    Ho, Wo = H, W
    cb = jnp.dtype(compute_dtype).itemsize
    ob = jnp.dtype(out_dtype).itemsize

    lo = _round_up(Ho * Wp, 128)                          # lane-dense out block
    lp = _round_up(max(Hp * Wp, lo + 2 * Wp + 2), 128)    # room for max shift

    def est_bytes(cout_b):
        return (2 * Cin * lp * cb            # input block (double-buffered)
                + 2 * cout_b * lo * ob       # output block (double-buffered)
                + 2 * 9 * cout_b * Cin * cb  # weights
                + 4 * cout_b * 4             # scale + bias
                + cout_b * lo * 4            # f32 accumulator temp
                + Cin * lo * cb              # shifted-tap temp
                + cout_b * lo * 4)           # per-tap matmul result temp

    cout_b = None
    for c in _cout_block_candidates(Cout):
        if est_bytes(c) <= _VMEM_BUDGET_BYTES:
            cout_b = c
            break
    if cout_b is None:
        return None  # does not fit the VMEM budget -> caller uses im2col path

    # Padded input, flattened spatial dim, zero-padded to lp (multiple of 128).
    x_pad = jnp.pad(x, ((0, 0), (0, 0), (1, 1), (1, 1))).astype(compute_dtype)
    x_flat = x_pad.reshape(N, Cin, Hp * Wp)
    x_flat = jnp.pad(x_flat, ((0, 0), (0, 0), (0, lp - Hp * Wp)))

    # Weights: (Cout, Cin, 3, 3) -> (9, Cout, Cin), tap t = kh*3 + kw.
    w9 = jnp.transpose(w, (2, 3, 0, 1)).reshape(9, Cout, Cin)
    w9 = w9.astype(compute_dtype)

    kernel = functools.partial(_direct_conv_kernel, wp=Wp, lo=lo)
    n_cout = Cout // cout_b
    # NOTE: the weight/scale/bias specs are grid-invariant along the batch
    # axis; pipeline_mode=pl.Buffered(1) on them would reclaim one buffer.
    out_flat = pl.pallas_call(
        kernel,
        out_shape=jax.ShapeDtypeStruct((N, Cout, lo), out_dtype),
        grid=(N, n_cout),
        in_specs=[
            pl.BlockSpec((None, Cin, lp), lambda n, j: (n, 0, 0)),
            pl.BlockSpec((9, cout_b, Cin), lambda n, j: (0, j, 0)),
            pl.BlockSpec((cout_b, 1), lambda n, j: (j, 0)),
            pl.BlockSpec((cout_b, 1), lambda n, j: (j, 0)),
        ],
        out_specs=pl.BlockSpec((None, cout_b, lo), lambda n, j: (n, j, 0)),
        compiler_params=pltpu.CompilerParams(
            dimension_semantics=("parallel", "parallel"),
            vmem_limit_bytes=_VMEM_LIMIT_BYTES),
    )(x_flat, w9, scale, bias)

    # (N, Cout, Ho*Wp[+pad]) -> (N, Cout, Ho, Wp) -> trim pad cols -> NCHW.
    out = out_flat[:, :, :Ho * Wp].reshape(N, Cout, Ho, Wp)[:, :, :, :Wo]
    return out


# ---------------------------------------------------------------------------
# Path B: general stride (or oversized shapes), transpose-free im2col matmul.
# ---------------------------------------------------------------------------
def _im2col_matmul_kernel(p_ref, w_ref, scale_ref, bias_ref, o_ref):
    # p_ref: (K, TR)  im2col patches, K = 9*Cin   (compute dtype)
    # w_ref: (Cout_b, K) conv weights              (compute dtype)
    acc = jnp.dot(w_ref[...], p_ref[...], preferred_element_type=jnp.float32)
    out = acc * scale_ref[...] + bias_ref[...]
    o_ref[...] = jnp.maximum(out, 0.0).astype(o_ref.dtype)


def _conv_bn_relu_im2col(x, w, scale, bias, stride, compute_dtype, out_dtype):
    N, Cin, H, W = x.shape
    Cout = w.shape[0]
    Ho = (H + 2 - 3) // stride + 1
    Wo = (W + 2 - 3) // stride + 1
    K = 9 * Cin
    rb = Ho * Wo                       # output pixels per image
    rb_pad = _round_up(rb, 128)        # lane-dense row dimension
    cb = jnp.dtype(compute_dtype).itemsize
    ob = jnp.dtype(out_dtype).itemsize

    def est_bytes(cout_b, tr):
        return (2 * K * tr * cb          # patch block (double-buffered)
                + 2 * cout_b * tr * ob   # output block (double-buffered)
                + 2 * cout_b * K * cb    # weight block
                + 4 * cout_b * 4         # scale + bias
                + cout_b * tr * 4)       # f32 matmul result temp

    cout_b, tr = None, 128
    for c in _cout_block_candidates(Cout):
        fitting = [t for t in (2048, 1024, 512, 256, 128)
                   if rb_pad % t == 0 and est_bytes(c, t) <= _VMEM_BUDGET_BYTES]
        if fitting:
            cout_b, tr = c, fitting[0]
            break
    if cout_b is None:
        # Degenerate fallback: smallest blocks; may spill but stays correct.
        cout_b, tr = _cout_block_candidates(Cout)[-1], 128

    # im2col WITHOUT transposing the 9x-inflated tensor: stack taps on a new
    # axis next to Cin (K index = tap*Cin + cin), batch stays outermost so the
    # kernel writes the output directly in (N, Cout, Ho*Wo) layout.
    x_pad = jnp.pad(x, ((0, 0), (0, 0), (1, 1), (1, 1))).astype(compute_dtype)
    taps = []
    for kh in range(3):
        for kw in range(3):
            taps.append(x_pad[:, :,
                              kh:kh + (Ho - 1) * stride + 1:stride,
                              kw:kw + (Wo - 1) * stride + 1:stride])
    p = jnp.stack(taps, axis=1).reshape(N, K, rb)
    p = jnp.pad(p, ((0, 0), (0, 0), (0, rb_pad - rb)))

    # (Cout, Cin, 3, 3) -> (Cout, 3, 3, Cin) -> (Cout, 9*Cin): matches tap*Cin+cin.
    w2d = jnp.transpose(w, (0, 2, 3, 1)).reshape(Cout, K).astype(compute_dtype)

    grid = (N, Cout // cout_b, rb_pad // tr)
    out_flat = pl.pallas_call(
        _im2col_matmul_kernel,
        out_shape=jax.ShapeDtypeStruct((N, Cout, rb_pad), out_dtype),
        grid=grid,
        in_specs=[
            pl.BlockSpec((None, K, tr), lambda n, j, i: (n, 0, i)),
            pl.BlockSpec((cout_b, K), lambda n, j, i: (j, 0)),
            pl.BlockSpec((cout_b, 1), lambda n, j, i: (j, 0)),
            pl.BlockSpec((cout_b, 1), lambda n, j, i: (j, 0)),
        ],
        out_specs=pl.BlockSpec((None, cout_b, tr), lambda n, j, i: (n, j, i)),
        compiler_params=pltpu.CompilerParams(
            dimension_semantics=("parallel", "parallel", "parallel"),
            vmem_limit_bytes=_VMEM_LIMIT_BYTES),
    )(p, w2d, scale, bias)

    return out_flat[:, :, :rb].reshape(N, Cout, Ho, Wo)


# ---------------------------------------------------------------------------
# Public entry: Conv_bn_33.forward equivalent (eval-mode BatchNorm).
# ---------------------------------------------------------------------------
def conv_bn_33(x, weight, gamma, beta, running_mean, running_var,
               stride=1, eps=1e-5, compute_dtype=jnp.bfloat16, out_dtype=None):
    if out_dtype is None:
        out_dtype = x.dtype
    Cout = weight.shape[0]

    # Fuse BatchNorm (eval mode) into per-channel scale/bias, applied in the
    # f32 epilogue inside the kernel (not folded into bf16 weights).
    inv = (gamma.astype(jnp.float32)
           / jnp.sqrt(running_var.astype(jnp.float32) + eps)).reshape(Cout, 1)
    fused_bias = (beta.astype(jnp.float32).reshape(Cout, 1)
                  - running_mean.astype(jnp.float32).reshape(Cout, 1) * inv)

    if stride == 1:
        out = _conv_bn_relu_direct_s1(x, weight, inv, fused_bias,
                                      compute_dtype, out_dtype)
        if out is not None:
            return out
    # stride != 1, or the direct path does not fit the VMEM budget.
    return _conv_bn_relu_im2col(x, weight, inv, fused_bias, stride,
                                compute_dtype, out_dtype)


def _reference(x, w, gamma, beta, rm, rv, stride, eps=1e-5):
    out = jax.lax.conv_general_dilated(
        x, w, window_strides=(stride, stride), padding=((1, 1), (1, 1)),
        dimension_numbers=("NCHW", "OIHW", "NCHW"))
    inv = (gamma / jnp.sqrt(rv + eps)).reshape(1, -1, 1, 1)
    out = (out - rm.reshape(1, -1, 1, 1)) * inv + beta.reshape(1, -1, 1, 1)
    return jnp.maximum(out, 0.0)


if __name__ == "__main__":
    key = jax.random.PRNGKey(0)
    k_x, k_w, k_g, k_b, k_m, k_v = jax.random.split(key, 6)

    N, Cin, H, W = 2, 4, 16, 16
    Cout = 8

    x = jax.random.normal(k_x, (N, Cin, H, W), dtype=jnp.float32)
    # nn.Conv2d weight shape: (oup, inp, 3, 3)
    weight = jax.random.normal(k_w, (Cout, Cin, 3, 3), dtype=jnp.float32) * 0.1
    # BatchNorm2d parameters / running stats (deterministic synthetic values)
    gamma = 1.0 + 0.1 * jax.random.normal(k_g, (Cout,), dtype=jnp.float32)
    beta = 0.1 * jax.random.normal(k_b, (Cout,), dtype=jnp.float32)
    running_mean = 0.1 * jax.random.normal(k_m, (Cout,), dtype=jnp.float32)
    running_var = jnp.abs(jax.random.normal(k_v, (Cout,), dtype=jnp.float32)) + 0.5

    # f32 compute path: near-exact vs the XLA conv reference.
    # stride=1 exercises the direct (no-im2col) kernel, stride=2 the im2col one.
    for stride in (1, 2):
        out = conv_bn_33(x, weight, gamma, beta, running_mean, running_var,
                         stride=stride, compute_dtype=jnp.float32)
        out = jax.block_until_ready(out)
        ref = _reference(x, weight, gamma, beta, running_mean, running_var,
                         stride)
        np.testing.assert_allclose(np.asarray(out), np.asarray(ref),
                                   rtol=1e-4, atol=1e-4)

    # Default bf16 MXU operands (f32 accumulation + f32 epilogue).
    for stride in (1, 2):
        out = conv_bn_33(x, weight, gamma, beta, running_mean, running_var,
                         stride=stride)
        out = jax.block_until_ready(out)
        ref = _reference(x, weight, gamma, beta, running_mean, running_var,
                         stride)
        np.testing.assert_allclose(np.asarray(out), np.asarray(ref),
                                   rtol=5e-2, atol=5e-2)

    # bf16 output writeback (halves output HBM traffic in a mem-bound kernel).
    out_bf16 = conv_bn_33(x, weight, gamma, beta, running_mean, running_var,
                          stride=1, out_dtype=jnp.bfloat16)
    out_bf16 = jax.block_until_ready(out_bf16)
    ref1 = _reference(x, weight, gamma, beta, running_mean, running_var, 1)
    np.testing.assert_allclose(np.asarray(out_bf16, dtype=np.float32),
                               np.asarray(ref1), rtol=5e-2, atol=5e-2)

    print("KERNEL_OK")
</pallas_src>

<mosaic_0001>
module attributes {stable_mosaic.version = 11 : i64} {
  func.func @_direct_conv_kernel(%arg0: i32, %arg1: i32, %arg2: memref<1x4x512xf32, #tpu.memory_space<vmem>>, %arg3: memref<9x8x4xf32, #tpu.memory_space<vmem>>, %arg4: memref<8x1xf32, #tpu.memory_space<vmem>>, %arg5: memref<8x1xf32, #tpu.memory_space<vmem>>, %arg6: memref<1x8x384xf32, #tpu.memory_space<vmem>>) attributes {dimension_semantics = [#tpu.dimension_semantics<parallel>, #tpu.dimension_semantics<parallel>], iteration_bounds = array<i64: 2, 1>, scalar_prefetch = 0 : i64, scratch_operands = 0 : i64, tpu.core_type = #tpu.core_type<tc>, window_params = [{transform_indices = @transform_0, window_bounds = array<i64: 1, 4, 512>}, {transform_indices = @transform_1, window_bounds = array<i64: 9, 8, 4>}, {transform_indices = @transform_2, window_bounds = array<i64: 8, 1>}, {transform_indices = @transform_3, window_bounds = array<i64: 8, 1>}, {transform_indices = @transform_4, window_bounds = array<i64: 1, 8, 384>}]} {
    %cst = arith.constant 0.000000e+00 : f32
    %0 = vector.broadcast %cst : f32 to vector<8x384xf32>
    %c0 = arith.constant 0 : index
    %c0_0 = arith.constant 0 : index
    %c0_1 = arith.constant 0 : index
    %1 = vector.load %arg2[%c0, %c0_0, %c0_1] : memref<1x4x512xf32, #tpu.memory_space<vmem>>, vector<1x4x384xf32>
    %2 = vector.shape_cast %1 : vector<1x4x384xf32> to vector<4x384xf32>
    %c0_2 = arith.constant 0 : index
    %c0_3 = arith.constant 0 : index
    %c0_4 = arith.constant 0 : index
    %3 = vector.load %arg3[%c0_2, %c0_3, %c0_4] : memref<9x8x4xf32, #tpu.memory_space<vmem>>, vector<1x8x4xf32>
    %4 = vector.shape_cast %3 : vector<1x8x4xf32> to vector<8x4xf32>
    %cst_5 = arith.constant dense<0.000000e+00> : vector<8x384xf32>
    %5 = tpu.matmul %4, %2, %cst_5 {dimension_numbers = #tpu.dot_dimension_numbers<[1], [0], [0], [1], [0, 0, 1, 1], [], []>} : vector<8x4xf32>, vector<4x384xf32>, vector<8x384xf32> -> vector<8x384xf32>
    %6 = arith.addf %0, %5 : vector<8x384xf32>
    %c0_6 = arith.constant 0 : index
    %c0_7 = arith.constant 0 : index
    %c1 = arith.constant 1 : index
    %7 = vector.load %arg2[%c0_6, %c0_7, %c1] : memref<1x4x512xf32, #tpu.memory_space<vmem>>, vector<1x4x384xf32>
    %8 = vector.shape_cast %7 : vector<1x4x384xf32> to vector<4x384xf32>
    %c1_8 = arith.constant 1 : index
    %c0_9 = arith.constant 0 : index
    %c0_10 = arith.constant 0 : index
    %9 = vector.load %arg3[%c1_8, %c0_9, %c0_10] : memref<9x8x4xf32, #tpu.memory_space<vmem>>, vector<1x8x4xf32>
    %10 = vector.shape_cast %9 : vector<1x8x4xf32> to vector<8x4xf32>
    %cst_11 = arith.constant dense<0.000000e+00> : vector<8x384xf32>
    %11 = tpu.matmul %10, %8, %cst_11 {dimension_numbers = #tpu.dot_dimension_numbers<[1], [0], [0], [1], [0, 0, 1, 1], [], []>} : vector<8x4xf32>, vector<4x384xf32>, vector<8x384xf32> -> vector<8x384xf32>
    %12 = arith.addf %6, %11 : vector<8x384xf32>
    %c0_12 = arith.constant 0 : index
    %c0_13 = arith.constant 0 : index
    %c2 = arith.constant 2 : index
    %13 = vector.load %arg2[%c0_12, %c0_13, %c2] : memref<1x4x512xf32, #tpu.memory_space<vmem>>, vector<1x4x384xf32>
    %14 = vector.shape_cast %13 : vector<1x4x384xf32> to vector<4x384xf32>
    %c2_14 = arith.constant 2 : index
    %c0_15 = arith.constant 0 : index
    %c0_16 = arith.constant 0 : index
    %15 = vector.load %arg3[%c2_14, %c0_15, %c0_16] : memref<9x8x4xf32, #tpu.memory_space<vmem>>, vector<1x8x4xf32>
    %16 = vector.shape_cast %15 : vector<1x8x4xf32> to vector<8x4xf32>
    %cst_17 = arith.constant dense<0.000000e+00> : vector<8x384xf32>
    %17 = tpu.matmul %16, %14, %cst_17 {dimension_numbers = #tpu.dot_dimension_numbers<[1], [0], [0], [1], [0, 0, 1, 1], [], []>} : vector<8x4xf32>, vector<4x384xf32>, vector<8x384xf32> -> vector<8x384xf32>
    %18 = arith.addf %12, %17 : vector<8x384xf32>
    %c0_18 = arith.constant 0 : index
    %c0_19 = arith.constant 0 : index
    %c18 = arith.constant 18 : index
    %19 = vector.load %arg2[%c0_18, %c0_19, %c18] : memref<1x4x512xf32, #tpu.memory_space<vmem>>, vector<1x4x384xf32>
    %20 = vector.shape_cast %19 : vector<1x4x384xf32> to vector<4x384xf32>
    %c3 = arith.constant 3 : index
    %c0_20 = arith.constant 0 : index
    %c0_21 = arith.constant 0 : index
    %21 = vector.load %arg3[%c3, %c0_20, %c0_21] : memref<9x8x4xf32, #tpu.memory_space<vmem>>, vector<1x8x4xf32>
    %22 = vector.shape_cast %21 : vector<1x8x4xf32> to vector<8x4xf32>
    %cst_22 = arith.constant dense<0.000000e+00> : vector<8x384xf32>
    %23 = tpu.matmul %22, %20, %cst_22 {dimension_numbers = #tpu.dot_dimension_numbers<[1], [0], [0], [1], [0, 0, 1, 1], [], []>} : vector<8x4xf32>, vector<4x384xf32>, vector<8x384xf32> -> vector<8x384xf32>
    %24 = arith.addf %18, %23 : vector<8x384xf32>
    %c0_23 = arith.constant 0 : index
    %c0_24 = arith.constant 0 : index
    %c19 = arith.constant 19 : index
    %25 = vector.load %arg2[%c0_23, %c0_24, %c19] : memref<1x4x512xf32, #tpu.memory_space<vmem>>, vector<1x4x384xf32>
    %26 = vector.shape_cast %25 : vector<1x4x384xf32> to vector<4x384xf32>
    %c4 = arith.constant 4 : index
    %c0_25 = arith.constant 0 : index
    %c0_26 = arith.constant 0 : index
    %27 = vector.load %arg3[%c4, %c0_25, %c0_26] : memref<9x8x4xf32, #tpu.memory_space<vmem>>, vector<1x8x4xf32>
    %28 = vector.shape_cast %27 : vector<1x8x4xf32> to vector<8x4xf32>
    %cst_27 = arith.constant dense<0.000000e+00> : vector<8x384xf32>
    %29 = tpu.matmul %28, %26, %cst_27 {dimension_numbers = #tpu.dot_dimension_numbers<[1], [0], [0], [1], [0, 0, 1, 1], [], []>} : vector<8x4xf32>, vector<4x384xf32>, vector<8x384xf32> -> vector<8x384xf32>
    %30 = arith.addf %24, %29 : vector<8x384xf32>
    %c0_28 = arith.constant 0 : index
    %c0_29 = arith.constant 0 : index
    %c20 = arith.constant 20 : index
    %31 = vector.load %arg2[%c0_28, %c0_29, %c20] : memref<1x4x512xf32, #tpu.memory_space<vmem>>, vector<1x4x384xf32>
    %32 = vector.shape_cast %31 : vector<1x4x384xf32> to vector<4x384xf32>
    %c5 = arith.constant 5 : index
    %c0_30 = arith.constant 0 : index
    %c0_31 = arith.constant 0 : index
    %33 = vector.load %arg3[%c5, %c0_30, %c0_31] : memref<9x8x4xf32, #tpu.memory_space<vmem>>, vector<1x8x4xf32>
    %34 = vector.shape_cast %33 : vector<1x8x4xf32> to vector<8x4xf32>
    %cst_32 = arith.constant dense<0.000000e+00> : vector<8x384xf32>
    %35 = tpu.matmul %34, %32, %cst_32 {dimension_numbers = #tpu.dot_dimension_numbers<[1], [0], [0], [1], [0, 0, 1, 1], [], []>} : vector<8x4xf32>, vector<4x384xf32>, vector<8x384xf32> -> vector<8x384xf32>
    %36 = arith.addf %30, %35 : vector<8x384xf32>
    %c0_33 = arith.constant 0 : index
    %c0_34 = arith.constant 0 : index
    %c36 = arith.constant 36 : index
    %37 = vector.load %arg2[%c0_33, %c0_34, %c36] : memref<1x4x512xf32, #tpu.memory_space<vmem>>, vector<1x4x384xf32>
    %38 = vector.shape_cast %37 : vector<1x4x384xf32> to vector<4x384xf32>
    %c6 = arith.constant 6 : index
    %c0_35 = arith.constant 0 : index
    %c0_36 = arith.constant 0 : index
    %39 = vector.load %arg3[%c6, %c0_35, %c0_36] : memref<9x8x4xf32, #tpu.memory_space<vmem>>, vector<1x8x4xf32>
    %40 = vector.shape_cast %39 : vector<1x8x4xf32> to vector<8x4xf32>
    %cst_37 = arith.constant dense<0.000000e+00> : vector<8x384xf32>
    %41 = tpu.matmul %40, %38, %cst_37 {dimension_numbers = #tpu.dot_dimension_numbers<[1], [0], [0], [1], [0, 0, 1, 1], [], []>} : vector<8x4xf32>, vector<4x384xf32>, vector<8x384xf32> -> vector<8x384xf32>
    %42 = arith.addf %36, %41 : vector<8x384xf32>
    %c0_38 = arith.constant 0 : index
    %c0_39 = arith.constant 0 : index
    %c37 = arith.constant 37 : index
    %43 = vector.load %arg2[%c0_38, %c0_39, %c37] : memref<1x4x512xf32, #tpu.memory_space<vmem>>, vector<1x4x384xf32>
    %44 = vector.shape_cast %43 : vector<1x4x384xf32> to vector<4x384xf32>
    %c7 = arith.constant 7 : index
    %c0_40 = arith.constant 0 : index
    %c0_41 = arith.constant 0 : index
    %45 = vector.load %arg3[%c7, %c0_40, %c0_41] : memref<9x8x4xf32, #tpu.memory_space<vmem>>, vector<1x8x4xf32>
    %46 = vector.shape_cast %45 : vector<1x8x4xf32> to vector<8x4xf32>
    %cst_42 = arith.constant dense<0.000000e+00> : vector<8x384xf32>
    %47 = tpu.matmul %46, %44, %cst_42 {dimension_numbers = #tpu.dot_dimension_numbers<[1], [0], [0], [1], [0, 0, 1, 1], [], []>} : vector<8x4xf32>, vector<4x384xf32>, vector<8x384xf32> -> vector<8x384xf32>
    %48 = arith.addf %42, %47 : vector<8x384xf32>
    %c0_43 = arith.constant 0 : index
    %c0_44 = arith.constant 0 : index
    %c38 = arith.constant 38 : index
    %49 = vector.load %arg2[%c0_43, %c0_44, %c38] : memref<1x4x512xf32, #tpu.memory_space<vmem>>, vector<1x4x384xf32>
    %50 = vector.shape_cast %49 : vector<1x4x384xf32> to vector<4x384xf32>
    %c8 = arith.constant 8 : index
    %c0_45 = arith.constant 0 : index
    %c0_46 = arith.constant 0 : index
    %51 = vector.load %arg3[%c8, %c0_45, %c0_46] : memref<9x8x4xf32, #tpu.memory_space<vmem>>, vector<1x8x4xf32>
    %52 = vector.shape_cast %51 : vector<1x8x4xf32> to vector<8x4xf32>
    %cst_47 = arith.constant dense<0.000000e+00> : vector<8x384xf32>
    %53 = tpu.matmul %52, %50, %cst_47 {dimension_numbers = #tpu.dot_dimension_numbers<[1], [0], [0], [1], [0, 0, 1, 1], [], []>} : vector<8x4xf32>, vector<4x384xf32>, vector<8x384xf32> -> vector<8x384xf32>
    %54 = arith.addf %48, %53 : vector<8x384xf32>
    %c0_48 = arith.constant 0 : index
    %c0_49 = arith.constant 0 : index
    %55 = vector.load %arg4[%c0_48, %c0_49] : memref<8x1xf32, #tpu.memory_space<vmem>>, vector<8x1xf32>
    %56 = vector.broadcast %55 : vector<8x1xf32> to vector<8x384xf32>
    %57 = arith.mulf %54, %56 : vector<8x384xf32>
    %c0_50 = arith.constant 0 : index
    %c0_51 = arith.constant 0 : index
    %58 = vector.load %arg5[%c0_50, %c0_51] : memref<8x1xf32, #tpu.memory_space<vmem>>, vector<8x1xf32>
    %59 = vector.broadcast %58 : vector<8x1xf32> to vector<8x384xf32>
    %60 = arith.addf %57, %59 : vector<8x384xf32>
    %cst_52 = arith.constant 0.000000e+00 : f32
    %61 = vector.broadcast %cst_52 : f32 to vector<8x384xf32>
    %62 = arith.maximumf %60, %61 : vector<8x384xf32>
    %c0_53 = arith.constant 0 : index
    %c0_54 = arith.constant 0 : index
    %c0_55 = arith.constant 0 : index
    %63 = vector.load %arg6[%c0_53, %c0_54, %c0_55] : memref<1x8x384xf32, #tpu.memory_space<vmem>>, vector<1x8x384xf32>
    %64 = vector.shape_cast %63 : vector<1x8x384xf32> to vector<8x384xf32>
    %65 = vector.shape_cast %62 : vector<8x384xf32> to vector<1x8x384xf32>
    tpu.vector_store %arg6[%c0_53, %c0_54, %c0_55], %65 {strides = array<i32>} : memref<1x8x384xf32, #tpu.memory_space<vmem>>, vector<1x8x384xf32>,
    return
  }
  func.func @transform_0(%arg0: i32, %arg1: i32) -> (i32, i32, i32) {
    %c0_i32 = arith.constant 0 : i32
    %c0_i32_0 = arith.constant 0 : i32
    %c0_i32_1 = arith.constant 0 : i32
    return %arg0, %c0_i32, %c0_i32_0 : i32, i32, i32
  }
  func.func @transform_1(%arg0: i32, %arg1: i32) -> (i32, i32, i32) {
    %c0_i32 = arith.constant 0 : i32
    %c0_i32_0 = arith.constant 0 : i32
    %c0_i32_1 = arith.constant 0 : i32
    return %c0_i32, %arg1, %c0_i32_0 : i32, i32, i32
  }
  func.func @transform_2(%arg0: i32, %arg1: i32) -> (i32, i32) {
    %c0_i32 = arith.constant 0 : i32
    %c0_i32_0 = arith.constant 0 : i32
    return %arg1, %c0_i32 : i32, i32
  }
  func.func @transform_3(%arg0: i32, %arg1: i32) -> (i32, i32) {
    %c0_i32 = arith.constant 0 : i32
    %c0_i32_0 = arith.constant 0 : i32
    return %arg1, %c0_i32 : i32, i32
  }
  func.func @transform_4(%arg0: i32, %arg1: i32) -> (i32, i32, i32) {
    %c0_i32 = arith.constant 0 : i32
    %c0_i32_0 = arith.constant 0 : i32
    return %arg0, %arg1, %c0_i32 : i32, i32, i32
  }
}

</mosaic_0001>

<bundles_post_ra>
// kernel: tpu_custom_call.1
= control target key start
LH: loop header
LB: loop body
LE: loop exit
PB: predicated region body
PF: predicated region fallthrough
CT: control target
= control target key end

     0   :  { %9 = vsyncpa [#allocation3], 0  ;;  %s2565_s0 = inlined_call_operand.vmem [shape: f32[2,4,512], index: 0, kind: input, shape index: {}]   ;;  %s2566_s1 = inlined_call_operand.vmem [shape: f32[9,8,4], index: 1, kind: input, shape index: {}]   ;;  %s2567_s2 = inlined_call_operand.vmem [shape: f32[8,1], index: 2, kind: input, shape index: {}]   ;;  %s2568_s3 = inlined_call_operand.vmem [shape: f32[8,1], index: 3, kind: input, shape index: {}]   ;;  %s2569_s4 = inlined_call_operand.hbm [shape: f32[2,8,384], index: 4, kind: output, shape index: {}]  }
   0x1   :  { %11 = vsyncpa [#allocation3 + $0x1], 0  ;;  %s2307_s15 = smov 0   ;;  %s2309_s16 = smov 0  }
   0x2   :  { %s2311_s17 = smov 0   ;;  %s2313_s18 = smov 0  }
   0x3   :  { %s2315_s19 = smov 0   ;;  %s2317_s20 = smov 0  }
   0x4 LB: > { %s1956_s21 = sadd.s32 4294967295, %s2268_s20   ;;  %s1957_s22 = sadd.s32 4294967294, %s2268_s20   ;;  %s2268_s20 = sphi %s2317_s20, %s17_s20   ;;  %s2264_s19 = sphi %s2315_s19, %s2576_s19   ;;  %s2260_s18 = sphi %s2313_s18, %s2575_s18   ;;  %s2256_s17 = sphi %s2311_s17, %s2574_s17   ;;  %s2252_s16 = sphi %s2309_s16, %s2573_s16   ;;  %s2248_s15 = sphi %s2307_s15, %s2572_s15  }
   0x5   : > { %s29_s23 = sadd.s32 1, %s2264_s19  ;;  %s142_s24 = sadd.s32 1, %s2256_s17 }
   0x6   : > { %p31_p0 = scmp.ge.s32.totalorder %s29_s23, 2  ;;  %p152_p1 = scmp.ne.s32.totalorder %s2256_s17, %s2252_s16 }
   0x7   : > { %p153_p2 = scmp.eq.s32.totalorder %s1956_s21, 1  ;;  %p158_p3 = scmp.ne.s32.totalorder %s2252_s16, %s2248_s15 }
   0x8   : > { %s2578_s23 = smov (%p31_p0, %s29_s23), 0  ;;  %p159_p5 = scmp.eq.s32.totalorder %s1957_s22, 1 }
   0x9   : > { %p2347_p4 = por %p153_p2, %p152_p1  ;;  %s137_s26 = ssub.s32 %s2264_s19, %s2578_s23 }
   0xa   : > { %p1963_p6 = scmp.ge.s32.totalorder %s2268_s20, 1  ;;  %p140_p7 = scmp.eq.s32.totalorder %s137_s26, 0 }
   0xb   : > { %p2354_p8 = por %p159_p5, %p158_p3  ;;  %p206_p9 = scmp.lt.s32.totalorder %s2268_s20, 3 }
   0xc   : > { %s2360_s28 = scalar_select %p140_p7, %s2256_s17, %s142_s24  }
   0xd   : > { %p207_p10 = pnand %p1963_p6, %p206_p9 }
   0xe   : > { %p244_p11 = scmp.lt.s32.totalorder (!%p207_p10), %s2260_s18, 1  ;;  %v2270_v0 = vmov (!%p207_p10), 0.0   ;;  %vm2271_vm0 = vmmov (!%p207_p10), 0   ;;  %s2272_s8 = smov (!%p207_p10), 127   ;;  %v2280_v5 = vmov (!%p207_p10), 0   ;;  %v1809_v6 = vld [vmem:[%s2568_s3] sm:$0xff] (!%p207_p10) }
   0xf   : > { %210 = sbr.rel (%p207_p10) target bundleno = 448 (0x1c0), region = 36  ;;  %2041 = vmatprep.subr.mxu1 (!%p207_p10), %v2270_v0  ;;  %2043 = vmatprep.mubr.msk.f32.mxu1 (!%p207_p10), %vm2271_vm0, %v2270_v0  ;;  %s2273_s9 = smov (!%p207_p10), 126   ;;  %v1800_v7 = vld [vmem:[%s2567_s2] sm:$0xff] (!%p207_p10)  ;;  %vm280_vm1 = vcmask (!%p207_p10), 1039360   ;;  %vm288_vm2 = vcmask (!%p207_p10), 1043456   ;;  %v1966_v12 = vld [vmem:[%s2566_s1 + $0x8] sm:$0xff] (!%p207_p10) }
  0x10   : > { %359 = vmatprep.mubr.f32.mxu0 (!%p207_p10), %v2270_v0  ;;  %s2274_s10 = smov (!%p207_p10), 110   ;;  %s2275_s11 = smov (!%p207_p10), 109   ;;  %2186 = vset.pattern.permute.xlu0 (!%p207_p10), %v2280_v5  ;;  %vm284_vm3 = vcmask (!%p207_p10), 31744   ;;  %vm605_vm4 = vcmask (!%p207_p10), 1031168   ;;  %v263_v22 = vld [vmem:[%s2566_s1] sm:$0xff] (!%p207_p10)  ;;  %vm778_vm5 = vcmask (!%p207_p10), 900096  }
  0x11   : > { %s2276_s12 = smov (!%p207_p10), 108   ;;  %s2277_s13 = smov (!%p207_p10), 92   ;;  %2187 = vset.pattern.permute.xlu1 (!%p207_p10), %v2280_v5  ;;  %v1977_v30 = vld [vmem:[%s2566_s1 + $0x10] sm:$0xff] (!%p207_p10)  ;;  %vm951_vm6 = vcmask (!%p207_p10), 891904   ;;  %v1983_v38 = vld [vmem:[%s2566_s1 + $0x18] sm:$0xff] (!%p207_p10)  ;;  %vm1124_vm7 = vcmask (!%p207_p10), 883712  }
  0x12   : > { %s2278_s14 = smov (!%p207_p10), 91   ;;  %s2279_s21 = smov (!%p207_p10), 90   ;;  %v1989_v46 = vld [vmem:[%s2566_s1 + $0x20] sm:$0xff] (!%p207_p10)  ;;  %vm1297_vm8 = vcmask (!%p207_p10), 752640   ;;  %v1995_v54 = vld [vmem:[%s2566_s1 + $0x28] sm:$0xff] (!%p207_p10)  ;;  %vm1470_vm9 = vcmask (!%p207_p10), 744448  }
  0x13   : > { %v2001_v62 = vld [vmem:[%s2566_s1 + $0x30] sm:$0xff] (!%p207_p10)  ;;  %vm1643_vm10 = vcmask (!%p207_p10), 736256   ;;  %s241_s6 = sand.u32 (!%p207_p10), 1, %s2252_s16  }
  0x16   : > { %s245_s29 = scalar_select %p244_p11, %s2260_s18, 1 }
  0x18   : > { %s2022_s30 = sshll.u32 %s245_s29, 4 }
  0x19   : > { %s2371_s7 = scalar_lea.vmem %s2565_s0, %s2022_s30 }
  0x1a   : > { %v2374_v1 = vld [vmem:[%s2371_s7] sm:$0xff]  ;;  %v265_v2 = vld [vmem:[%s2371_s7 + $0x8] sm:$0xff] }
  0x1b   : > { %272 = vrot.lane.b32.xlu1 %v2374_v1, %s2272_s8  ;;  %v2380_v3 = vcombine.high %v2374_v1, %v2374_v1  ;;  %v271_v4 = vcombine.high %v265_v2, %v265_v2  ;;  %v262_v17 = vld [vmem:[%s2371_s7 + $0x8] sm:$0xf]  ;;  %s2118_s7 = smul.u32 24, %s241_s6 }
  0x1d   : > { %274 = vrot.lane.b32.xlu0 %v2380_v3, %s2272_s8 }
  0x1f   : > { %278 = vrot.lane.b32.xlu1 %v271_v4, %s2272_s8 }
  0x21   : > { %276 = vrot.lane.b32.xlu0 %v265_v2, %s2272_s8  ;;  %s2119_s8 = smul.u32 384, %s2260_s18  ;;  %s1825_s18 = scalar_lea.sflag [#allocation3], %s241_s6 }
  0x23   : > { %601 = vrot.lane.b32.xlu1 %v265_v2, %s2273_s9 }
  0x25   : > { %599 = vrot.lane.b32.xlu0 %v2380_v3, %s2273_s9 }
  0x27   : > { %603 = vrot.lane.b32.xlu1 %v271_v4, %s2273_s9 }
  0x29   : > { %597 = vrot.lane.b32.xlu0 %v2374_v1, %s2273_s9  ;;  %s243_s9 = scalar_lea.vmem [#allocation2], %s2118_s7 }
  0x2b   : > { %774 = vrot.lane.b32.xlu1 %v265_v2, %s2274_s10 }
  0x2d   : > { %772 = vrot.lane.b32.xlu0 %v2380_v3, %s2274_s10 }
  0x2f   : > { %776 = vrot.lane.b32.xlu1 %v271_v4, %s2274_s10 }
  0x31   : > { %770 = vrot.lane.b32.xlu0 %v2374_v1, %s2274_s10  ;;  %s1841_s10 = sshll.u32 %s243_s9, 4  ;;  %s2520_s10 = int_to_ptr.vmem [resolvable:$true] %s1841_s10 }
  0x33   : > { %947 = vrot.lane.b32.xlu1 %v265_v2, %s2275_s11 }
  0x35   : > { %945 = vrot.lane.b32.xlu0 %v2380_v3, %s2275_s11 }
  0x37   : > { %949 = vrot.lane.b32.xlu1 %v271_v4, %s2275_s11 }
  0x39   : > { %943 = vrot.lane.b32.xlu0 %v2374_v1, %s2275_s11 }
  0x3b   : > { %1120 = vrot.lane.b32.xlu1 %v265_v2, %s2276_s12 }
  0x3d   : > { %1118 = vrot.lane.b32.xlu0 %v2380_v3, %s2276_s12 }
  0x3f   : > { %1122 = vrot.lane.b32.xlu1 %v271_v4, %s2276_s12 }
  0x41   : > { %1116 = vrot.lane.b32.xlu0 %v2374_v1, %s2276_s12 }
  0x43   : > { %1293 = vrot.lane.b32.xlu1 %v265_v2, %s2277_s13 }
  0x45   : > { %1291 = vrot.lane.b32.xlu0 %v2380_v3, %s2277_s13 }
  0x47   : > { %1295 = vrot.lane.b32.xlu1 %v271_v4, %s2277_s13 }
  0x49   : > { %1289 = vrot.lane.b32.xlu0 %v2374_v1, %s2277_s13  ;;  %s2518_s13 = scalar_lea.hbm %s2569_s4, %s2119_s8 }
  0x4b   : > { %1466 = vrot.lane.b32.xlu1 %v265_v2, %s2278_s14 }
  0x4d   : > { %1464 = vrot.lane.b32.xlu0 %v2380_v3, %s2278_s14 }
  0x4f   : > { %1468 = vrot.lane.b32.xlu1 %v271_v4, %s2278_s14 }
  0x51   : > { %1462 = vrot.lane.b32.xlu0 %v2374_v1, %s2278_s14  ;;  %s2190_s14 = scalar_lea.vmem %s2520_s10, 384 }
  0x52   : > { %p2191_p12 = scmp.ne.s32.totalorder %s2520_s10, %s2190_s14 }
  0x53   : > { %1639 = vrot.lane.b32.xlu1 %v265_v2, %s2279_s21 }
  0x54   : > { %p2192_p13 = pnand %p2191_p12, %p2347_p4 }
  0x55   : > { %1637 = vrot.lane.b32.xlu0 %v2380_v3, %s2279_s21 }
  0x56   : > { %p2193_p0 = pneg %p2192_p13 }
  0x57   : > { %1641 = vrot.lane.b32.xlu1 %v271_v4, %s2279_s21 }
  0x59   : > { %1635 = vrot.lane.b32.xlu0 %v2374_v1, %s2279_s21  ;;  %s2281_s21 = smov [#allocation2]  }
  0x5a   : > { %s2194_s22 = sshll.u32 %s2281_s21, 4  ;;  %s2195_s22 = int_to_ptr.vmem [resolvable:$false] %s2194_s22 }
  0x5b   : > { %1812 = vperm.xlu1 %2187, %v1809_v6   ;;  %s2196_s24 = scalar_lea.vmem %s2195_s22, 768  ;;  %p2197_p1 = scmp.lt.s32.totalorder %s2520_s10, %s2195_s22 }
  0x5c   : > { %p2198_p2 = scmp.lt.s32.totalorder %s2196_s24, %s2190_s14 }
  0x5d   : > { %1803 = vperm.xlu0 %2186, %v1800_v7   ;;  %v2007_v7 = vld [vmem:[%s2566_s1 + $0x38] sm:$0xff] }
  0x5e   : > { %p2199_p3 = por %p2198_p2, %p2197_p1 }
  0x60   : > { %p2200_p5 = pnand %p2199_p3, %p2193_p0 }
  0x8d   : > { %v273_v8 = vpop.permute.xlu1 %272 }
  0x8f   : > { %v275_v9 = vpop.permute.xlu0 %274 }
  0x90   : > { %v281_v15 = vsel %vm280_vm1, %v273_v8, %v275_v9 }
  0x91   : > { %v279_v10 = vpop.permute.xlu1 %278 }
  0x93   : > { %v277_v11 = vpop.permute.xlu0 %276 }
  0x94   : > { %v282_v13 = vsel %vm280_vm1, %v275_v9, %v277_v11  ;;  %v283_v14 = vsel %vm280_vm1, %v277_v11, %v279_v10  ;;  %v2013_v10 = vld [vmem:[%s2566_s1 + $0x40] sm:$0xff] }
  0x95   : > { %1967 = vmatprep.subr.msk.mxu0 %vm288_vm2, %v282_v13  ;;  %2042 = vmatpush3.msk.msra.mxu1 %vm288_vm2, %v283_v14  ;;  %v602_v16 = vpop.permute.xlu1 %601 }
  0x96   : > { %1968 = vmatpush1.msk.msra.mxu0 %vm288_vm2, %v281_v15  ;;  %2044 = vmatmul.mubr.msk.f32.vlgmr.msra.gmra.mrb[0].mxu1 %vm284_vm3, %v1966_v12 }
  0x97   : > { %1969 = vmatmul.mubr.msk.f32.vlgmr.msra.gmra.mrb[0].mxu0 %vm284_vm3, %v1966_v12  ;;  %v600_v18 = vpop.permute.xlu0 %599  ;;  %1972 = vmatprep.subr.msk.mxu0 %vm288_vm2, %v2380_v3 }
  0x98   : > { %v607_v19 = vsel %vm605_vm4, %v600_v18, %v602_v16  ;;  %1973 = vmatpush1.msk.msra.mxu0 %vm288_vm2, %v2374_v1  ;;  %2046 = vmatprep.subr.mxu1 %v2270_v0 }
  0x99   : > { %2047 = vmatpush3.msk.msra.mxu1 %vm288_vm2, %v262_v17  ;;  %v604_v20 = vpop.permute.xlu1 %603  ;;  %1978 = vmatprep.subr.msk.mxu0 %vm288_vm2, %v607_v19 }
  0x9a   : > { %2048 = vmatprep.mubr.msk.f32.mxu1 %vm2271_vm0, %v2270_v0  ;;  %2051 = vmatprep.subr.mxu1 %v2270_v0  ;;  %v608_v23 = vsel %vm605_vm4, %v602_v16, %v604_v20 }
  0x9b   : > { %v598_v21 = vpop.permute.xlu0 %597  ;;  %512 = vmatprep.mubr.f32.mxu0 %v2270_v0 }
  0x9c   : > { %v606_v24 = vsel %vm605_vm4, %v598_v21, %v600_v18 }
  0x9d   : > { %v775_v25 = vpop.permute.xlu1 %774 }
  0x9e   : > { %2049 = vmatmul.mubr.msk.f32.vlgmr.msra.gmra.mrb[0].mxu1 %vm284_vm3, %v263_v22 }
  0x9f   : > { %2052 = vmatpush3.msk.msra.mxu1 %vm288_vm2, %v608_v23  ;;  %v773_v26 = vpop.permute.xlu0 %772  ;;  %1974 = vmatmul.mubr.msk.f32.vlgmr.msra.gmra.mrb[0].mxu0 %vm284_vm3, %v263_v22 }
  0xa0   : > { %v780_v27 = vsel %vm778_vm5, %v773_v26, %v775_v25  ;;  %1979 = vmatpush1.msk.msra.mxu0 %vm288_vm2, %v606_v24  ;;  %2053 = vmatprep.mubr.msk.f32.mxu1 %vm2271_vm0, %v2270_v0 }
  0xa1   : > { %v777_v28 = vpop.permute.xlu1 %776  ;;  %1984 = vmatprep.subr.msk.mxu0 %vm288_vm2, %v780_v27  ;;  %2056 = vmatprep.subr.mxu1 %v2270_v0 }
  0xa2   : > { %682 = vmatprep.mubr.f32.mxu0 %v2270_v0  ;;  %v781_v31 = vsel %vm778_vm5, %v775_v25, %v777_v28 }
  0xa3   : > { %v771_v29 = vpop.permute.xlu0 %770 }
  0xa4   : > { %v779_v32 = vsel %vm778_vm5, %v771_v29, %v773_v26 }
  0xa5   : > { %v948_v33 = vpop.permute.xlu1 %947 }
  0xa6   : > { %2054 = vmatmul.mubr.msk.f32.vlgmr.msra.gmra.mrb[0].mxu1 %vm284_vm3, %v1977_v30 }
  0xa7   : > { %2057 = vmatpush3.msk.msra.mxu1 %vm288_vm2, %v781_v31  ;;  %v946_v34 = vpop.permute.xlu0 %945  ;;  %1980 = vmatmul.mubr.msk.f32.vlgmr.msra.gmra.mrb[0].mxu0 %vm284_vm3, %v1977_v30 }
  0xa8   : > { %v953_v35 = vsel %vm951_vm6, %v946_v34, %v948_v33  ;;  %1985 = vmatpush1.msk.msra.mxu0 %vm288_vm2, %v779_v32  ;;  %2058 = vmatprep.mubr.msk.f32.mxu1 %vm2271_vm0, %v2270_v0 }
  0xa9   : > { %v950_v36 = vpop.permute.xlu1 %949  ;;  %1990 = vmatprep.subr.msk.mxu0 %vm288_vm2, %v953_v35  ;;  %2061 = vmatprep.subr.mxu1 %v2270_v0 }
  0xaa   : > { %855 = vmatprep.mubr.f32.mxu0 %v2270_v0  ;;  %v954_v39 = vsel %vm951_vm6, %v948_v33, %v950_v36 }
  0xab   : > { %v944_v37 = vpop.permute.xlu0 %943 }
  0xac   : > { %v952_v40 = vsel %vm951_vm6, %v944_v37, %v946_v34 }
  0xad   : > { %v1121_v41 = vpop.permute.xlu1 %1120 }
  0xae   : > { %2059 = vmatmul.mubr.msk.f32.vlgmr.msra.gmra.mrb[0].mxu1 %vm284_vm3, %v1983_v38 }
  0xaf   : > { %2062 = vmatpush3.msk.msra.mxu1 %vm288_vm2, %v954_v39  ;;  %v1119_v42 = vpop.permute.xlu0 %1118  ;;  %1986 = vmatmul.mubr.msk.f32.vlgmr.msra.gmra.mrb[0].mxu0 %vm284_vm3, %v1983_v38 }
  0xb0   : > { %v1126_v43 = vsel %vm1124_vm7, %v1119_v42, %v1121_v41  ;;  %1991 = vmatpush1.msk.msra.mxu0 %vm288_vm2, %v952_v40  ;;  %2063 = vmatprep.mubr.msk.f32.mxu1 %vm2271_vm0, %v2270_v0 }
  0xb1   : > { %v1123_v44 = vpop.permute.xlu1 %1122  ;;  %1996 = vmatprep.subr.msk.mxu0 %vm288_vm2, %v1126_v43  ;;  %2066 = vmatprep.subr.mxu1 %v2270_v0 }
  0xb2   : > { %1028 = vmatprep.mubr.f32.mxu0 %v2270_v0  ;;  %v1127_v47 = vsel %vm1124_vm7, %v1121_v41, %v1123_v44 }
  0xb3   : > { %v1117_v45 = vpop.permute.xlu0 %1116 }
  0xb4   : > { %v1125_v48 = vsel %vm1124_vm7, %v1117_v45, %v1119_v42 }
  0xb5   : > { %v1294_v49 = vpop.permute.xlu1 %1293 }
  0xb6   : > { %2064 = vmatmul.mubr.msk.f32.vlgmr.msra.gmra.mrb[0].mxu1 %vm284_vm3, %v1989_v46 }
  0xb7   : > { %2067 = vmatpush3.msk.msra.mxu1 %vm288_vm2, %v1127_v47  ;;  %v1292_v50 = vpop.permute.xlu0 %1291  ;;  %1992 = vmatmul.mubr.msk.f32.vlgmr.msra.gmra.mrb[0].mxu0 %vm284_vm3, %v1989_v46 }
  0xb8   : > { %v1299_v51 = vsel %vm1297_vm8, %v1292_v50, %v1294_v49  ;;  %1997 = vmatpush1.msk.msra.mxu0 %vm288_vm2, %v1125_v48  ;;  %2068 = vmatprep.mubr.msk.f32.mxu1 %vm2271_vm0, %v2270_v0 }
  0xb9   : > { %v1296_v52 = vpop.permute.xlu1 %1295  ;;  %2002 = vmatprep.subr.msk.mxu0 %vm288_vm2, %v1299_v51  ;;  %2071 = vmatprep.subr.mxu1 %v2270_v0 }
  0xba   : > { %1201 = vmatprep.mubr.f32.mxu0 %v2270_v0  ;;  %v1300_v55 = vsel %vm1297_vm8, %v1294_v49, %v1296_v52 }
  0xbb   : > { %v1290_v53 = vpop.permute.xlu0 %1289 }
  0xbc   : > { %v1298_v56 = vsel %vm1297_vm8, %v1290_v53, %v1292_v50 }
  0xbd   : > { %v1467_v57 = vpop.permute.xlu1 %1466 }
  0xbe   : > { %2069 = vmatmul.mubr.msk.f32.vlgmr.msra.gmra.mrb[0].mxu1 %vm284_vm3, %v1995_v54 }
  0xbf   : > { %2072 = vmatpush3.msk.msra.mxu1 %vm288_vm2, %v1300_v55  ;;  %v1465_v58 = vpop.permute.xlu0 %1464  ;;  %1998 = vmatmul.mubr.msk.f32.vlgmr.msra.gmra.mrb[0].mxu0 %vm284_vm3, %v1995_v54 }
  0xc0   : > { %v1472_v59 = vsel %vm1470_vm9, %v1465_v58, %v1467_v57  ;;  %2003 = vmatpush1.msk.msra.mxu0 %vm288_vm2, %v1298_v56  ;;  %2073 = vmatprep.mubr.msk.f32.mxu1 %vm2271_vm0, %v2270_v0 }
  0xc1   : > { %v1469_v60 = vpop.permute.xlu1 %1468  ;;  %2008 = vmatprep.subr.msk.mxu0 %vm288_vm2, %v1472_v59  ;;  %2076 = vmatprep.subr.mxu1 %v2270_v0 }
  0xc2   : > { %1374 = vmatprep.mubr.f32.mxu0 %v2270_v0  ;;  %v1473_v63 = vsel %vm1470_vm9, %v1467_v57, %v1469_v60 }
  0xc3   : > { %v1463_v61 = vpop.permute.xlu0 %1462 }
  0xc4   : > { %v1471_v1 = vsel %vm1470_vm9, %v1463_v61, %v1465_v58 }
  0xc5   : > { %v1640_v2 = vpop.permute.xlu1 %1639 }
  0xc6   : > { %2074 = vmatmul.mubr.msk.f32.vlgmr.msra.gmra.mrb[0].mxu1 %vm284_vm3, %v2001_v62 }
  0xc7   : > { %2077 = vmatpush3.msk.msra.mxu1 %vm288_vm2, %v1473_v63  ;;  %v1638_v3 = vpop.permute.xlu0 %1637  ;;  %2004 = vmatmul.mubr.msk.f32.vlgmr.msra.gmra.mrb[0].mxu0 %vm284_vm3, %v2001_v62 }
  0xc8   : > { %v1645_v4 = vsel %vm1643_vm10, %v1638_v3, %v1640_v2  ;;  %2009 = vmatpush1.msk.msra.mxu0 %vm288_vm2, %v1471_v1  ;;  %2078 = vmatprep.mubr.msk.f32.mxu1 %vm2271_vm0, %v2270_v0 }
  0xc9   : > { %v1642_v5 = vpop.permute.xlu1 %1641  ;;  %2014 = vmatprep.subr.msk.mxu0 %vm288_vm2, %v1645_v4  ;;  %2081 = vmatprep.subr.mxu1 %v2270_v0 }
  0xca   : > { %1547 = vmatprep.mubr.f32.mxu0 %v2270_v0  ;;  %v1646_v8 = vsel %vm1643_vm10, %v1640_v2, %v1642_v5 }
  0xcb   : > { %v1636_v6 = vpop.permute.xlu0 %1635 }
  0xcc   : > { %v1644_v9 = vsel %vm1643_vm10, %v1636_v6, %v1638_v3 }
  0xce   : > { %2079 = vmatmul.mubr.msk.f32.vlgmr.msra.gmra.mrb[0].mxu1 %vm284_vm3, %v2007_v7 }
  0xcf   : > { %2082 = vmatpush3.msk.msra.mxu1 %vm288_vm2, %v1646_v8  ;;  %2010 = vmatmul.mubr.msk.f32.vlgmr.msra.gmra.mrb[0].mxu0 %vm284_vm3, %v2007_v7 }
  0xd0   : > { %2015 = vmatpush1.msk.msra.mxu0 %vm288_vm2, %v1644_v9  ;;  %2083 = vmatprep.mubr.msk.f32.mxu1 %vm2271_vm0, %v2270_v0 }
  0xd1   : > { %1720 = vmatprep.mubr.f32.mxu0 %v2270_v0 }
  0xd6   : > { %2084 = vmatmul.mubr.msk.f32.vlgmr.msra.gmra.mrb[0].mxu1 %vm284_vm3, %v2013_v10 }
  0xd7   : > { %2016 = vmatmul.mubr.msk.f32.vlgmr.msra.gmra.mrb[0].mxu0 %vm284_vm3, %v2013_v10 }
  0xda   : > { %v1813_v13 = vpop.permute.xlu1 %1812 }
  0xdc   : > { %v1804_v11 = vpop.permute.xlu0 %1803 }
 0x1a9   : > { %v1793_v12 = vpop.f32.mrb[0].mxu1 }
 0x1aa   : > { %v1808_v14 = vmul.f32 %v1804_v11, %v1793_v12  ;;  %v1722_v15 = vpop.f32.mrb[0].mxu0  ;;  %v2085_v16 = vpop.f32.mrb[1].mxu1 }
 0x1ab   : > { %v1806_v17 = vmul.f32 %v1804_v11, %v1722_v15  ;;  %v1724_v18 = vpop.f32.mrb[1].mxu0 }
 0x1ac   : > { %v1817_v0 = vadd.f32 %v1813_v13, %v1808_v14  ;;  %v1807_v19 = vmul.f32 %v1804_v11, %v1724_v18 }
 0x1ad   : > { %v1815_v20 = vadd.f32 %v1813_v13, %v1806_v17 }
 0x1ae   : > { %v1820_v21 = vmax.f32 %v1817_v0, 0.0  ;;  %v1816_v22 = vadd.f32 %v1813_v13, %v1807_v19 }
 0x1af   : > { %v1818_v23 = vmax.f32 %v1815_v20, 0.0 }
 0x1b0   : > { %1823 = vst [vmem:[%s243_s9 + $0x10] sm:$0xff] %v1820_v21  ;;  %v1819_v24 = vmax.f32 %v1816_v22, 0.0 }
 0x1b1   : > { %1821 = vst [vmem:[%s243_s9] sm:$0xff] %v1818_v23 }
 0x1b2   : > { %1822 = vst [vmem:[%s243_s9 + $0x8] sm:$0xff] %v1819_v24 }
 0x1b3   : > { %2203 = shalt.err (!%p2200_p5)
}
 0x1b4   : > { %s2204_s26 = scalar_lea.hbm %s2518_s13, 384  ;;  %s2208_s5 = scalar_lea.hbm %s2569_s4, 768 }
 0x1b5   : > { %p2205_p6 = scmp.ne.s32.totalorder %s2518_s13, %s2204_s26  ;;  %p2209_p10 = scmp.lt.u32.totalorder %s2518_s13, %s2569_s4 }
 0x1b6   : > { %p2210_p11 = scmp.lt.u32.totalorder %s2208_s5, %s2204_s26  ;;  %p2212_p13 = scmp.lt.u32.totalorder %s2204_s26, %s2518_s13 }
 0x1b7   : > { %p2206_p7 = pnand %p2205_p6, %p2347_p4 }
 0x1b8   : > { %p2211_p12 = por %p2210_p11, %p2209_p10 }
 0x1b9   : > { %p2207_p9 = pneg %p2206_p7 }
 0x1ba   : > { %p2213_p0 = por %p2212_p13, %p2211_p12 }
 0x1bc   : > { %p2214_p1 = pnand %p2213_p0, %p2207_p9 }
 0x1be   : > { %2217 = shalt.err (!%p2214_p1)
}
 0x1bf   : > { %2120 = dma.vmem_to_hbm [thread:$0]  (%p2347_p4), %s2520_s10, 384, %s2518_s13, %s1825_s18  }
 0x1c0 PF: > { %p2126_p2 = scmp.ge.s32.totalorder %s2268_s20, 2  ;;  %s1853_s8 = sand.u32 1, %s2248_s15  }
 0x1c1   : > { %s1854_s9 = scalar_lea.sflag [#allocation3], %s1853_s8 }
 0x1c2   : > { %p2123_p3 = pnand %p2126_p2, %p2354_p8 }
 0x1c4   : > { %2243 = dma.done.wait (!%p2123_p3), %s1854_s9, 384  }
 0x1c5   : > { %2245 = vsyncadd (!%p2123_p3), %s1854_s9, 4294966912  ;;  %s17_s20 = sadd.s32 1, %s2268_s20   ;;  %s2572_s15 = smov %s2252_s16 }
 0x1c6   : > { %p14_p5 = scmp.ge.s32.totalorder %s17_s20, 4   ;;  %s2573_s16 = smov %s2256_s17 }
 0x1c7   : > { %s2574_s17 = smov %s2360_s28  ;;  %s2575_s18 = smov %s2264_s19 }
 0x1c8   : > { %s2576_s19 = smov %s2578_s23  ;;  %16 = sbr.rel (!%p14_p5) target bundleno = 4 (0x4), region = 88 }
 0x1cf   :  { %1859 = vsyncpa [#allocation3], 1 }
 0x1d0   :  { %1861 = vsyncpa [#allocation3 + $0x1], 1 }

</bundles_post_ra>
